<compile_context>
chip_gen: v7x
topology: tpu7x:2x2x1
jax: 0.10.0
libtpu: 0.0.40
codegen_flags: <defaults>
</compile_context>

<pallas_src>
import jax
import jax.numpy as jnp
from jax.experimental import pallas as pl
from jax.experimental.pallas import tpu as pltpu

CUTOFF = 5.0
EXPONENT = 5
RBF_DIM = 20
HIDDEN = 128
EDGE_FEAT = 338                     # mat_trans input width (overlap features)
SH_DIM = 32 * 3 + 16 * 5            # Irreps('32x1e+16x2e') -> 176 dims
MAX_TILE_E = 1024                   # upper bound on edge rows per grid step


# ----------------------------------------------------------------------------
# Pallas kernel: envelope + Linear(338->128) + SiLU + Linear(128->128) + SiLU
# ----------------------------------------------------------------------------
def _edge_mlp_kernel(xattr_ref, d_ref, w1_ref, b1_ref, w2_ref, b2_ref, neo_ref):
    # DimeNet polynomial envelope (cutoff=5, exponent=5), f32 on the VPU.
    p = float(EXPONENT)
    x = d_ref[...] * (1.0 / CUTOFF)                           # [T, 1]
    a = -(p + 1.0) * (p + 2.0) / 2.0
    b = p * (p + 2.0)
    c = -p * (p + 1.0) / 2.0
    x5 = x * x * x * x * x
    env = 1.0 + a * x5 + b * x5 * x + c * x5 * x * x
    env = jnp.where(x < 1.0, env, 0.0)

    # (env * x_e) @ W1 == env * (x_e @ W1): env is a per-row scalar, so scale
    # the 128-lane matmul output instead of the 338-lane input.
    xe = xattr_ref[...].astype(jnp.bfloat16)                  # cast on the VMEM tile
    z1 = env * jnp.dot(xe, w1_ref[...],
                       preferred_element_type=jnp.float32) + b1_ref[...]
    h1 = z1 * jax.nn.sigmoid(z1)                              # SiLU, f32
    z2 = jnp.dot(h1.astype(jnp.bfloat16), w2_ref[...],
                 preferred_element_type=jnp.float32) + b2_ref[...]
    neo_ref[...] = (z2 * jax.nn.sigmoid(z2)).astype(neo_ref.dtype)


def _choose_tile_e(e):
    """Edge rows per grid step: big tiles, but keep >= 2 grid steps on large
    graphs so v7x's two TensorCores both get work (grid axis is 'parallel')."""
    e8 = max(8, ((e + 7) // 8) * 8)             # sublane-aligned
    if e8 <= 512:
        return e8                               # tiny graph: single step
    half = (e8 + 1) // 2
    half = ((half + 255) // 256) * 256          # ceil(e/2) rounded to 256 rows
    return min(MAX_TILE_E, half)


def edge_mlp_pallas(edge_attr, bond_distances, kparams, out_dtype=jnp.float32):
    """Fused envelope + mat_trans + SiLU + emb_trans + SiLU.  Returns [E, 128]."""
    e = edge_attr.shape[0]
    tile_e = _choose_tile_e(e)
    grid = (pl.cdiv(e, tile_e),)
    d = bond_distances.astype(jnp.float32).reshape(e, 1)

    row2 = lambda i: (i, 0)
    const2 = lambda i: (0, 0)
    # Weights/biases never change across grid steps: a single pipeline buffer
    # (no double-buffering) avoids redundant VMEM copies.
    wspec = lambda shape: pl.BlockSpec(shape, const2, pipeline_mode=pl.Buffered(1))

    return pl.pallas_call(
        _edge_mlp_kernel,
        out_shape=jax.ShapeDtypeStruct((e, HIDDEN), out_dtype),
        grid_spec=pltpu.PrefetchScalarGridSpec(
            num_scalar_prefetch=0,
            grid=grid,
            in_specs=[
                pl.BlockSpec((tile_e, EDGE_FEAT), row2),   # edge_attr (unpadded, f32)
                pl.BlockSpec((tile_e, 1), row2),           # |r_ij|
                wspec((EDGE_FEAT, HIDDEN)),                # W1 (bf16, constant)
                wspec((1, HIDDEN)),                        # b1 (f32)
                wspec((HIDDEN, HIDDEN)),                   # W2 (bf16, constant)
                wspec((1, HIDDEN)),                        # b2 (f32)
            ],
            out_specs=pl.BlockSpec((tile_e, HIDDEN), row2)),
        compiler_params=pltpu.CompilerParams(
            dimension_semantics=("parallel",)),
    )(edge_attr, d, kparams["w1"], kparams["b1"], kparams["w2"], kparams["b2"])


# ----------------------------------------------------------------------------
# Plain-JAX geometry glue
# ----------------------------------------------------------------------------
def poly_envelope(d):
    """DimeNet polynomial envelope u(d/cutoff), p = exponent = 5."""
    p = float(EXPONENT)
    x = d / CUTOFF
    env = (1.0 - (p + 1.0) * (p + 2.0) / 2.0 * x ** p
           + p * (p + 2.0) * x ** (p + 1.0)
           - p * (p + 1.0) / 2.0 * x ** (p + 2.0))
    return jnp.where(x < 1.0, env, 0.0)


def bessel_rbf(d):
    """RadialBasis(cutoff=5, embedding_size=20) — Bessel radial basis."""
    n = jnp.arange(1, RBF_DIM + 1, dtype=jnp.float32)
    d_safe = jnp.maximum(d, 1e-9)[:, None]      # guard zero-length edges
    return jnp.sqrt(2.0 / CUTOFF) * jnp.sin(n * jnp.pi * d_safe / CUTOFF) / d_safe


def spherical_harmonics(vec):
    """e3nn SphericalHarmonics('32x1e+16x2e', normalize=True, normalization='norm')."""
    d = jnp.linalg.norm(vec, axis=1, keepdims=True)
    u = vec / jnp.maximum(d, 1e-12)
    x, y, z = u[:, 0], u[:, 1], u[:, 2]
    s3 = jnp.sqrt(3.0)
    y1 = u                                                               # [E, 3]
    y2 = jnp.stack([s3 * x * z, s3 * x * y,
                    y * y - 0.5 * (x * x + z * z),
                    s3 * y * z, 0.5 * s3 * (z * z - x * x)], axis=1)     # [E, 5]
    return jnp.concatenate([jnp.tile(y1, (1, 32)), jnp.tile(y2, (1, 16))], axis=1)


def prepare_params(params):
    """One-time kernel-ready weight prep (hoisted out of the per-call forward)."""
    return {
        "w1": params["w_mat"].astype(jnp.bfloat16),                     # [338, 128]
        "b1": params["b_mat"].reshape(1, HIDDEN).astype(jnp.float32),
        "w2": params["w_emb"].astype(jnp.bfloat16),                     # [128, 128]
        "b2": params["b_emb"].reshape(1, HIDDEN).astype(jnp.float32),
    }


def datapre_forward(kparams, atom_pos, edge_index, edge_attr):
    """JAX/Pallas port of DataPre.forward (single graph: batch == zeros)."""
    num_nodes = atom_pos.shape[0]
    num_edges = edge_index.shape[1]
    src, dst = edge_index[0], edge_index[1]

    bond_vector = atom_pos[src] - atom_pos[dst]
    bond_distances = jnp.linalg.norm(bond_vector, axis=1)

    node_batch = jnp.zeros((num_nodes,), jnp.int32)
    edge_batch = jnp.zeros((num_edges,), jnp.int32)

    # Returned envelope: trivial VPU polynomial, fused by XLA outside the kernel
    # (the kernel recomputes it internally for the activation scaling).
    envelop_para = poly_envelope(bond_distances)[:, None]

    neo_x = edge_mlp_pallas(edge_attr.astype(jnp.float32), bond_distances, kparams)

    rsh = spherical_harmonics(bond_vector)
    node_rbf = bessel_rbf(bond_distances)

    # TODO(synk): vertex_to_edge (edge->edge line-graph construction) has no
    # definition in the prompt; neo_edge_index is left as None.
    neo_data = {
        "x_scalar": neo_x,
        "x_vector": rsh,
        "edge_index": None,
        "batch": edge_batch,
        "node_rbf": node_rbf,
        "rsh": rsh,
    }
    return neo_data, edge_index[0], node_batch, envelop_para


# ----------------------------------------------------------------------------
# Deterministic params + example run
# ----------------------------------------------------------------------------
def init_params(key):
    # TODO(synk): Glorot_Ortho_ init replaced with Glorot-normal (no def given).
    k1, k2 = jax.random.split(key, 2)
    g1 = (2.0 / (EDGE_FEAT + HIDDEN)) ** 0.5
    g2 = (2.0 / (HIDDEN + HIDDEN)) ** 0.5
    return {
        "w_mat": jax.random.normal(k1, (EDGE_FEAT, HIDDEN), jnp.float32) * g1,
        "b_mat": jnp.zeros((HIDDEN,), jnp.float32),
        "w_emb": jax.random.normal(k2, (HIDDEN, HIDDEN), jnp.float32) * g2,
        "b_emb": jnp.zeros((HIDDEN,), jnp.float32),
    }


def _edge_mlp_ref(edge_attr, bond_d, w1, b1, w2, b2):
    """Plain-JAX f32 reference of the fused Pallas path."""
    env = poly_envelope(bond_d)[:, None]
    z1 = (edge_attr * env) @ w1 + b1
    z2 = jax.nn.silu(z1) @ w2 + b2
    return jax.nn.silu(z2), env


if __name__ == "__main__":
    key = jax.random.PRNGKey(0)
    kp, ka, ke = jax.random.split(key, 3)

    N_ATOMS = 12
    N_EDGES = 16

    params = init_params(kp)
    kparams = prepare_params(params)            # one-time bf16 weight prep
    atom_pos = jax.random.uniform(ka, (N_ATOMS, 3), jnp.float32) * 3.0
    src = jnp.arange(N_EDGES, dtype=jnp.int32) % N_ATOMS
    dst = (jnp.arange(N_EDGES, dtype=jnp.int32) + 1) % N_ATOMS
    edge_index = jnp.stack([src, dst], axis=0)                      # [2, E]
    edge_attr = jax.random.normal(ke, (N_EDGES, EDGE_FEAT), jnp.float32) * 0.1

    neo_data, edge_src, node_batch, envelop_para = datapre_forward(
        kparams, atom_pos, edge_index, edge_attr)
    jax.block_until_ready((neo_data["x_scalar"], neo_data["x_vector"],
                           neo_data["node_rbf"], edge_src, node_batch,
                           envelop_para))

    assert neo_data["x_scalar"].shape == (N_EDGES, HIDDEN)
    assert neo_data["x_vector"].shape == (N_EDGES, SH_DIM)
    assert neo_data["node_rbf"].shape == (N_EDGES, RBF_DIM)
    assert envelop_para.shape == (N_EDGES, 1)
    assert edge_src.shape == (N_EDGES,)
    assert node_batch.shape == (N_ATOMS,)

    # Numerical sanity vs. plain-JAX f32 reference (bf16 MXU tolerance).
    bond_vec = atom_pos[src] - atom_pos[dst]
    bond_d = jnp.linalg.norm(bond_vec, axis=1)
    ref_neo, ref_env = _edge_mlp_ref(edge_attr, bond_d,
                                     params["w_mat"], params["b_mat"],
                                     params["w_emb"], params["b_emb"])
    assert jnp.max(jnp.abs(neo_data["x_scalar"] - ref_neo)) < 3e-2
    assert jnp.max(jnp.abs(envelop_para - ref_env)) < 1e-4

    print("KERNEL_OK")
</pallas_src>

<mosaic_0001>
module attributes {stable_mosaic.version = 11 : i64} {
  func.func @_edge_mlp_kernel(%arg0: i32, %arg1: memref<16x338xf32, #tpu.memory_space<vmem>>, %arg2: memref<16x1xf32, #tpu.memory_space<vmem>>, %arg3: memref<338x128xbf16, #tpu.memory_space<vmem>>, %arg4: memref<1x128xf32, #tpu.memory_space<vmem>>, %arg5: memref<128x128xbf16, #tpu.memory_space<vmem>>, %arg6: memref<1x128xf32, #tpu.memory_space<vmem>>, %arg7: memref<16x128xf32, #tpu.memory_space<vmem>>) attributes {dimension_semantics = [#tpu.dimension_semantics<parallel>], iteration_bounds = array<i64: 1>, scalar_prefetch = 0 : i64, scratch_operands = 0 : i64, tpu.core_type = #tpu.core_type<tc>, window_params = [{transform_indices = @transform_0, window_bounds = array<i64: 16, 338>}, {transform_indices = @transform_1, window_bounds = array<i64: 16, 1>}, {pipeline_mode = #tpu.pipeline_mode<synchronous>, transform_indices = @transform_2, window_bounds = array<i64: 338, 128>}, {pipeline_mode = #tpu.pipeline_mode<synchronous>, transform_indices = @transform_3, window_bounds = array<i64: 1, 128>}, {pipeline_mode = #tpu.pipeline_mode<synchronous>, transform_indices = @transform_4, window_bounds = array<i64: 128, 128>}, {pipeline_mode = #tpu.pipeline_mode<synchronous>, transform_indices = @transform_5, window_bounds = array<i64: 1, 128>}, {transform_indices = @transform_6, window_bounds = array<i64: 16, 128>}]} {
    %c0 = arith.constant 0 : index
    %c0_0 = arith.constant 0 : index
    %0 = vector.load %arg2[%c0, %c0_0] : memref<16x1xf32, #tpu.memory_space<vmem>>, vector<16x1xf32>
    %cst = arith.constant 2.000000e-01 : f32
    %1 = vector.broadcast %cst : f32 to vector<16x1xf32>
    %2 = arith.mulf %0, %1 : vector<16x1xf32>
    %3 = arith.mulf %2, %2 : vector<16x1xf32>
    %4 = arith.mulf %3, %2 : vector<16x1xf32>
    %5 = arith.mulf %4, %2 : vector<16x1xf32>
    %6 = arith.mulf %5, %2 : vector<16x1xf32>
    %cst_1 = arith.constant -2.100000e+01 : f32
    %7 = vector.broadcast %cst_1 : f32 to vector<16x1xf32>
    %8 = arith.mulf %7, %6 : vector<16x1xf32>
    %cst_2 = arith.constant 1.000000e+00 : f32
    %9 = vector.broadcast %cst_2 : f32 to vector<16x1xf32>
    %10 = arith.addf %9, %8 : vector<16x1xf32>
    %cst_3 = arith.constant 3.500000e+01 : f32
    %11 = vector.broadcast %cst_3 : f32 to vector<16x1xf32>
    %12 = arith.mulf %11, %6 : vector<16x1xf32>
    %13 = arith.mulf %12, %2 : vector<16x1xf32>
    %14 = arith.addf %10, %13 : vector<16x1xf32>
    %cst_4 = arith.constant -1.500000e+01 : f32
    %15 = vector.broadcast %cst_4 : f32 to vector<16x1xf32>
    %16 = arith.mulf %15, %6 : vector<16x1xf32>
    %17 = arith.mulf %16, %2 : vector<16x1xf32>
    %18 = arith.mulf %17, %2 : vector<16x1xf32>
    %19 = arith.addf %14, %18 : vector<16x1xf32>
    %cst_5 = arith.constant 1.000000e+00 : f32
    %20 = vector.broadcast %cst_5 : f32 to vector<16x1xf32>
    %21 = arith.cmpf olt, %2, %20 : vector<16x1xf32>
    %cst_6 = arith.constant 0.000000e+00 : f32
    %22 = vector.broadcast %cst_6 : f32 to vector<16x1xf32>
    %23 = arith.select %21, %19, %22 : vector<16x1xi1>, vector<16x1xf32>
    %c0_7 = arith.constant 0 : index
    %c0_8 = arith.constant 0 : index
    %24 = vector.load %arg1[%c0_7, %c0_8] : memref<16x338xf32, #tpu.memory_space<vmem>>, vector<16x338xf32>
    %25 = arith.truncf %24 : vector<16x338xf32> to vector<16x338xbf16>
    %c0_9 = arith.constant 0 : index
    %c0_10 = arith.constant 0 : index
    %26 = vector.load %arg3[%c0_9, %c0_10] : memref<338x128xbf16, #tpu.memory_space<vmem>>, vector<338x128xbf16>
    %cst_11 = arith.constant dense<0.000000e+00> : vector<16x128xf32>
    %27 = tpu.matmul %25, %26, %cst_11 {dimension_numbers = #tpu.dot_dimension_numbers<[1], [0], [0], [1], [0, 0, 1, 1], [], []>} : vector<16x338xbf16>, vector<338x128xbf16>, vector<16x128xf32> -> vector<16x128xf32>
    %28 = vector.broadcast %23 : vector<16x1xf32> to vector<16x128xf32>
    %29 = arith.mulf %28, %27 : vector<16x128xf32>
    %c0_12 = arith.constant 0 : index
    %c0_13 = arith.constant 0 : index
    %30 = vector.load %arg4[%c0_12, %c0_13] : memref<1x128xf32, #tpu.memory_space<vmem>>, vector<1x128xf32>
    %31 = vector.broadcast %30 : vector<1x128xf32> to vector<16x128xf32>
    %32 = arith.addf %29, %31 : vector<16x128xf32>
    %33 = arith.negf %32 : vector<16x128xf32>
    %34 = math.exp %33 : vector<16x128xf32>
    %cst_14 = arith.constant 1.000000e+00 : f32
    %35 = vector.broadcast %cst_14 : f32 to vector<16x128xf32>
    %36 = arith.addf %35, %34 : vector<16x128xf32>
    %37 = arith.divf %35, %36 : vector<16x128xf32>
    %38 = arith.mulf %32, %37 : vector<16x128xf32>
    %39 = arith.truncf %38 : vector<16x128xf32> to vector<16x128xbf16>
    %c0_15 = arith.constant 0 : index
    %c0_16 = arith.constant 0 : index
    %40 = vector.load %arg5[%c0_15, %c0_16] : memref<128x128xbf16, #tpu.memory_space<vmem>>, vector<128x128xbf16>
    %cst_17 = arith.constant dense<0.000000e+00> : vector<16x128xf32>
    %41 = tpu.matmul %39, %40, %cst_17 {dimension_numbers = #tpu.dot_dimension_numbers<[1], [0], [0], [1], [0, 0, 1, 1], [], []>} : vector<16x128xbf16>, vector<128x128xbf16>, vector<16x128xf32> -> vector<16x128xf32>
    %c0_18 = arith.constant 0 : index
    %c0_19 = arith.constant 0 : index
    %42 = vector.load %arg6[%c0_18, %c0_19] : memref<1x128xf32, #tpu.memory_space<vmem>>, vector<1x128xf32>
    %43 = vector.broadcast %42 : vector<1x128xf32> to vector<16x128xf32>
    %44 = arith.addf %41, %43 : vector<16x128xf32>
    %45 = arith.negf %44 : vector<16x128xf32>
    %46 = math.exp %45 : vector<16x128xf32>
    %cst_20 = arith.constant 1.000000e+00 : f32
    %47 = vector.broadcast %cst_20 : f32 to vector<16x128xf32>
    %48 = arith.addf %47, %46 : vector<16x128xf32>
    %49 = arith.divf %47, %48 : vector<16x128xf32>
    %50 = arith.mulf %44, %49 : vector<16x128xf32>
    %c0_21 = arith.constant 0 : index
    %c0_22 = arith.constant 0 : index
    %51 = vector.load %arg7[%c0_21, %c0_22] : memref<16x128xf32, #tpu.memory_space<vmem>>, vector<16x128xf32>
    tpu.vector_store %arg7[%c0_21, %c0_22], %50 {strides = array<i32>} : memref<16x128xf32, #tpu.memory_space<vmem>>, vector<16x128xf32>,
    return
  }
  func.func @transform_0(%arg0: i32) -> (i32, i32) {
    %c0_i32 = arith.constant 0 : i32
    %c0_i32_0 = arith.constant 0 : i32
    return %arg0, %c0_i32 : i32, i32
  }
  func.func @transform_1(%arg0: i32) -> (i32, i32) {
    %c0_i32 = arith.constant 0 : i32
    %c0_i32_0 = arith.constant 0 : i32
    return %arg0, %c0_i32 : i32, i32
  }
  func.func @transform_2(%arg0: i32) -> (i32, i32) {
    %c0_i32 = arith.constant 0 : i32
    %c0_i32_0 = arith.constant 0 : i32
    %c0_i32_1 = arith.constant 0 : i32
    return %c0_i32, %c0_i32_0 : i32, i32
  }
  func.func @transform_3(%arg0: i32) -> (i32, i32) {
    %c0_i32 = arith.constant 0 : i32
    %c0_i32_0 = arith.constant 0 : i32
    %c0_i32_1 = arith.constant 0 : i32
    return %c0_i32, %c0_i32_0 : i32, i32
  }
  func.func @transform_4(%arg0: i32) -> (i32, i32) {
    %c0_i32 = arith.constant 0 : i32
    %c0_i32_0 = arith.constant 0 : i32
    %c0_i32_1 = arith.constant 0 : i32
    return %c0_i32, %c0_i32_0 : i32, i32
  }
  func.func @transform_5(%arg0: i32) -> (i32, i32) {
    %c0_i32 = arith.constant 0 : i32
    %c0_i32_0 = arith.constant 0 : i32
    %c0_i32_1 = arith.constant 0 : i32
    return %c0_i32, %c0_i32_0 : i32, i32
  }
  func.func @transform_6(%arg0: i32) -> (i32, i32) {
    %c0_i32 = arith.constant 0 : i32
    %c0_i32_0 = arith.constant 0 : i32
    return %arg0, %c0_i32 : i32, i32
  }
}

</mosaic_0001>

<bundles_post_ra>
// kernel: tpu_custom_call.1
= control target key start
LH: loop header
LB: loop body
LE: loop exit
PB: predicated region body
PF: predicated region fallthrough
CT: control target
= control target key end

     0   :  { %11 = vsyncpa [#allocation3], 0  ;;  %s950_s0 = inlined_call_operand.hbm [shape: f32[16,338], index: 0, kind: input, shape index: {}]   ;;  %s951_s1 = inlined_call_operand.vmem [shape: f32[16,1], index: 1, kind: input, shape index: {}]   ;;  %s952_s2 = inlined_call_operand.hbm [shape: bf16[338,128], index: 2, kind: input, shape index: {}]   ;;  %s953_s3 = inlined_call_operand.vmem [shape: f32[1,128], index: 3, kind: input, shape index: {}]   ;;  %s954_s4 = inlined_call_operand.hbm [shape: bf16[128,128], index: 4, kind: input, shape index: {}]   ;;  %s955_s5 = inlined_call_operand.vmem [shape: f32[1,128], index: 5, kind: input, shape index: {}]   ;;  %s956_s6 = inlined_call_operand.hbm [shape: f32[16,128], index: 6, kind: output, shape index: {}]  }
   0x1   :  { %12 = vsyncpa [#allocation6], 0 }
   0x2   :  { %13 = vsyncpa [#allocation4], 0  ;;  %s818_s21 = smov [#allocation5]   ;;  %s724_s25 = scalar_lea.hbm %s952_s2, 2752 }
   0x3   :  { %s33_s22 = sshll.u32 %s818_s21, 4  ;;  %p725_p0 = scmp.ne.s32.totalorder %s952_s2, %s724_s25  ;;  %s34_s22 = int_to_ptr.vmem [resolvable:$true] %s33_s22 }
   0x4   :  { %p728_p1 = scmp.lt.u32.totalorder %s724_s25, %s952_s2 }
   0x6   :  { %p730_p2 = pnand %p728_p1, %p725_p0 }
   0x8   :  { %733 = shalt.err (!%p730_p2)
}
   0x9   :  { %s734_s30 = scalar_lea.vmem %s34_s22, 2752  ;;  %p739_p4 = scmp.lt.s32.totalorder %s34_s22, %s34_s22 }
   0xa   :  { %p735_p3 = scmp.ne.s32.totalorder %s34_s22, %s734_s30  ;;  %p740_p5 = scmp.lt.s32.totalorder %s734_s30, %s734_s30 }
   0xc   :  { %p741_p6 = por %p740_p5, %p739_p4 }
   0xe   :  { %p742_p7 = pnand %p741_p6, %p735_p3 }
  0x10   :  { %745 = shalt.err (!%p742_p7)
}
  0x11   :  { %s819_s7 = smov 64   ;;  %s820_s8 = smov 4  }
  0x12   :  { %39 = dma.hbm_to_vmem [thread:$0]  %s952_s2, 2752, %s34_s22, [#allocation6], %s819_s7, %s819_s7, %s820_s8  }
  0x13   :  { %s821_s11 = smov [#allocation2]   ;;  %s746_s15 = scalar_lea.hbm %s950_s0, 768 }
  0x14   :  { %s19_s12 = sshll.u32 %s821_s11, 4  ;;  %p747_p8 = scmp.ne.s32.totalorder %s950_s0, %s746_s15  ;;  %s20_s12 = int_to_ptr.vmem [resolvable:$true] %s19_s12 }
  0x15   :  { %p750_p9 = scmp.lt.u32.totalorder %s746_s15, %s950_s0 }
  0x17   :  { %p752_p10 = pnand %p750_p9, %p747_p8 }
  0x19   :  { %755 = shalt.err (!%p752_p10)
}
  0x1a   :  { %s756_s20 = scalar_lea.vmem %s20_s12, 768  ;;  %p761_p12 = scmp.lt.s32.totalorder %s20_s12, %s20_s12 }
  0x1b   :  { %p757_p11 = scmp.ne.s32.totalorder %s20_s12, %s756_s20  ;;  %p762_p13 = scmp.lt.s32.totalorder %s756_s20, %s756_s20 }
  0x1d   :  { %p763_p0 = por %p762_p13, %p761_p12 }
  0x1f   :  { %p764_p1 = pnand %p763_p0, %p757_p11 }
  0x21   :  { %767 = shalt.err (!%p764_p1)
}
  0x22   :  { %s822_s2 = smov 384   ;;  %s823_s21 = smov 24  }
  0x23   :  { %25 = dma.hbm_to_vmem [thread:$0]  %s950_s0, 768, %s20_s12, [#allocation3], %s822_s2, %s822_s2, %s823_s21  }
  0x24   :  { %s824_s24 = smov [#allocation7]   ;;  %s768_s28 = scalar_lea.hbm %s954_s4, 1024 }
  0x25   :  { %s47_s25 = sshll.u32 %s824_s24, 4  ;;  %p769_p2 = scmp.ne.s32.totalorder %s954_s4, %s768_s28  ;;  %s48_s25 = int_to_ptr.vmem [resolvable:$true] %s47_s25 }
  0x26   :  { %p772_p3 = scmp.lt.u32.totalorder %s768_s28, %s954_s4 }
  0x28   :  { %p774_p4 = pnand %p772_p3, %p769_p2 }
  0x2a   :  { %777 = shalt.err (!%p774_p4)
}
  0x2b   :  { %s778_s11 = scalar_lea.vmem %s48_s25, 1024  ;;  %p783_p6 = scmp.lt.s32.totalorder %s48_s25, %s48_s25 }
  0x2c   :  { %p779_p5 = scmp.ne.s32.totalorder %s48_s25, %s778_s11  ;;  %p784_p7 = scmp.lt.s32.totalorder %s778_s11, %s778_s11 }
  0x2e   :  { %p785_p8 = por %p784_p7, %p783_p6 }
  0x30   :  { %p786_p9 = pnand %p785_p8, %p779_p5 }
  0x32   :  { %789 = shalt.err (!%p786_p9)
}
  0x33   :  { %53 = dma.hbm_to_vmem [thread:$0]  %s954_s4, 1024, %s48_s25, [#allocation6], %s819_s7, %s819_s7, %s820_s8  }
  0x34   :  { %812 = dma.done.wait [#allocation3], 768  }
  0x35   :  { %813 = vsyncadd [#allocation3], 4294966528 }
  0x36   :  { %814 = dma.done.wait [#allocation6], 3776  }
  0x37   :  { %815 = vsyncadd [#allocation6], 4294963520  ;;  %v825_v0 = vmov 0.0   ;;  %vm826_vm0 = vmmov 0   ;;  %v827_v1 = vmov 0   ;;  %v678_v2 = vld [vmem:[#allocation5 + $0x40] sm:$0xff]  }
  0x38   :  { %628 = vmatprep.subr.bf16.mxu1 %v825_v0  ;;  %640 = vmatprep.mubr.msk.bf16.mxu1 %vm826_vm0, %v825_v0  ;;  %v679_v3 = vld [vmem:[#allocation5] sm:$0xff]   ;;  %v680_v4 = vld [vmem:[#allocation5 + $0x48] sm:$0xff]   ;;  %v682_v6 = vld [vmem:[#allocation5 + $0x50] sm:$0xff]   ;;  %vm285_vm1 = vcmask 1040384   ;;  %vm281_vm2 = vcmask 670720   ;;  %s828_s16 = smov [#allocation8]  }
  0x39   :  { %677 = vset.pattern.permute.xlu0 %v827_v1  ;;  %590 = vmatprep.subr.bf16.mxu0 %v678_v2  ;;  %v681_v5 = vld [vmem:[#allocation5 + $0x8] sm:$0xff]   ;;  %v684_v7 = vld [vmem:[#allocation5 + $0x80] sm:$0xff]   ;;  %v683_v8 = vld [vmem:[#allocation5 + $0x10] sm:$0xff]   ;;  %s540_s17 = sshll.u32 %s828_s16, 4  ;;  %s541_s17 = int_to_ptr.vmem [resolvable:$true] %s540_s17 }
  0x3a   :  { %591 = vmatpush3.bf16.msra.mxu0 %v679_v3  ;;  %629 = vmatpush3.bf16.msra.mxu1 %v684_v7  ;;  %v685_v9 = vld [vmem:[#allocation5 + $0x58] sm:$0xff]   ;;  %v687_v10 = vld [vmem:[#allocation5 + $0x88] sm:$0xff]   ;;  %v688_v12 = vld [vmem:[#allocation5 + $0x60] sm:$0xff]   ;;  %p795_p11 = scmp.lt.s32.totalorder %s541_s17, %s541_s17 }
  0x3b   :  { %592 = vmatprep.subr.bf16.mxu0 %v680_v4  ;;  %630 = vmatprep.subr.bf16.mxu1 %v825_v0  ;;  %v686_v11 = vld [vmem:[#allocation5 + $0x18] sm:$0xff]   ;;  %v690_v13 = vld [vmem:[#allocation5 + $0x90] sm:$0xff]   ;;  %v689_v14 = vld [vmem:[#allocation5 + $0x20] sm:$0xff]  }
  0x3c   :  { %v691_v15 = vld [vmem:[#allocation5 + $0x68] sm:$0xff]   ;;  %v693_v16 = vld [vmem:[#allocation5 + $0x98] sm:$0xff]   ;;  %v694_v18 = vld [vmem:[#allocation5 + $0x70] sm:$0xff]  }
  0x3d   :  { %v692_v17 = vld [vmem:[#allocation5 + $0x28] sm:$0xff]   ;;  %v696_v19 = vld [vmem:[#allocation5 + $0xa0] sm:$0xff]   ;;  %v101_v21 = vld [vmem:[#allocation2 + $0x8] sm:$0xff] }
  0x3e   :  { %593 = vmatpush3.bf16.msra.mxu0 %v681_v5  ;;  %631 = vmatpush3.bf16.msra.mxu1 %v687_v10  ;;  %v699_v20 = vld [vmem:[#allocation5 + $0xa8] ss:$0 sps:$4 sm:$0x11]   ;;  %v695_v22 = vld [vmem:[#allocation5 + $0x30] sm:$0xff]   ;;  %v697_v24 = vld [vmem:[#allocation5 + $0x78] sm:$0xff]  }
  0x3f   :  { %594 = vmatprep.subr.bf16.mxu0 %v682_v6  ;;  %632 = vmatprep.subr.bf16.mxu1 %v825_v0  ;;  %v104_v23 = vld [vmem:[#allocation2 + $0x20] sm:$0xff]  ;;  %v287_v25 = vsel %vm285_vm1, %v699_v20, 0  ;;  %v102_v27 = vld [vmem:[#allocation2 + $0x10] sm:$0xff]  ;;  %v105_v29 = vld [vmem:[#allocation2 + $0x28] sm:$0xff] }
  0x40   :  { %v107_v26 = vpack.c.bf16 %v104_v23, %v101_v21  ;;  %v66_v28 = vld [vmem:[%s951_s1] sm:$0xff]  ;;  %v67_v31 = vld [vmem:[%s951_s1 + $0x8] sm:$0xff]  ;;  %v103_v36 = vld [vmem:[#allocation2 + $0x18] sm:$0xff]  ;;  %v108_v37 = vpack.c.bf16 %v105_v29, %v102_v27 }
  0x41   :  { %v68_v30 = vmul.f32 0.2, %v66_v28  ;;  %v698_v32 = vld [vmem:[#allocation5 + $0x38] sm:$0xff]   ;;  %v69_v33 = vmul.f32 0.2, %v67_v31  ;;  %v100_v34 = vld [vmem:[#allocation2] sm:$0xff] }
  0x42   :  { %595 = vmatpush3.bf16.msra.mxu0 %v683_v8  ;;  %633 = vmatpush3.bf16.msra.mxu1 %v690_v13  ;;  %v106_v41 = vpack.c.bf16 %v103_v36, %v100_v34  ;;  %v700_v3 = vld [vmem:[#allocation7] sm:$0xff]   ;;  %v701_v4 = vld [vmem:[#allocation7 + $0x8] sm:$0xff]   ;;  %v702_v5 = vld [vmem:[#allocation7 + $0x10] sm:$0xff]  }
  0x43   :  { %596 = vmatprep.subr.bf16.mxu0 %v685_v9  ;;  %634 = vmatprep.subr.bf16.mxu1 %v825_v0  ;;  %v70_v35 = vmul.f32 %v68_v30, %v68_v30  ;;  %v71_v38 = vmul.f32 %v69_v33, %v69_v33  ;;  %vm96_vm3 = vcmp.lt.f32.partialorder %v68_v30, 1.0  ;;  %vm97_vm4 = vcmp.lt.f32.partialorder %v69_v33, 1.0  ;;  %v703_v6 = vld [vmem:[#allocation7 + $0x18] sm:$0xff]   ;;  %v704_v7 = vld [vmem:[#allocation7 + $0x20] sm:$0xff]   ;;  %v705_v8 = vld [vmem:[#allocation7 + $0x28] sm:$0xff]  }
  0x44   :  { %321 = vmatprep.mubr.bf16.mxu0 %v107_v26  ;;  %v706_v9 = vld [vmem:[#allocation7 + $0x30] sm:$0xff]   ;;  %v707_v10 = vld [vmem:[#allocation7 + $0x38] sm:$0xff]   ;;  %v576_v23 = vld [vmem:[%s953_s3] ss:$0 sm:$0xff] }
  0x45   :  { %v72_v39 = vmul.f32 %v70_v35, %v68_v30  ;;  %v73_v40 = vmul.f32 %v71_v38, %v69_v33 }
  0x46   :  { %597 = vmatpush3.bf16.msra.mxu0 %v686_v11  ;;  %635 = vmatpush3.bf16.msra.mxu1 %v693_v16 }
  0x47   :  { %598 = vmatprep.subr.bf16.mxu0 %v688_v12  ;;  %636 = vmatprep.subr.bf16.mxu1 %v825_v0  ;;  %v74_v42 = vmul.f32 %v72_v39, %v68_v30  ;;  %v75_v43 = vmul.f32 %v73_v40, %v69_v33  ;;  %v579_v40 = vld [vmem:[%s955_s5] ss:$0 sm:$0xff]  ;;  %s790_s5 = scalar_lea.vmem %s541_s17, 256 }
  0x48   :  { %p791_p10 = scmp.ne.s32.totalorder %s541_s17, %s790_s5  ;;  %p796_p12 = scmp.lt.s32.totalorder %s790_s5, %s790_s5 }
  0x49   :  { %v76_v44 = vmul.f32 %v74_v42, %v68_v30  ;;  %v77_v45 = vmul.f32 %v75_v43, %v69_v33 }
  0x4a   :  { %599 = vmatpush3.bf16.msra.mxu0 %v689_v14  ;;  %637 = vmatpush3.bf16.msra.mxu1 %v696_v19  ;;  %p797_p13 = por %p796_p12, %p795_p11 }
  0x4b   :  { %600 = vmatprep.subr.bf16.mxu0 %v691_v15  ;;  %638 = vmatprep.subr.bf16.mxu1 %v825_v0  ;;  %v78_v46 = vmul.f32 -21.0, %v76_v44  ;;  %v82_v47 = vmul.f32 35.0, %v76_v44  ;;  %v88_v48 = vmul.f32 -15.0, %v76_v44  ;;  %v79_v49 = vmul.f32 -21.0, %v77_v45 }
  0x4c   :  { %v83_v50 = vmul.f32 35.0, %v77_v45  ;;  %v89_v51 = vmul.f32 -15.0, %v77_v45  ;;  %p798_p0 = pnand %p797_p13, %p791_p10 }
  0x4d   :  { %v80_v52 = vadd.f32 1.0, %v78_v46  ;;  %v84_v53 = vmul.f32 %v82_v47, %v68_v30  ;;  %v90_v54 = vmul.f32 %v88_v48, %v68_v30  ;;  %v81_v55 = vadd.f32 1.0, %v79_v49 }
  0x4e   :  { %601 = vmatpush3.bf16.msra.mxu0 %v692_v17  ;;  %639 = vmatpush3.bf16.msra.mxu1 %v287_v25  ;;  %v85_v56 = vmul.f32 %v83_v50, %v69_v33  ;;  %v91_v57 = vmul.f32 %v89_v51, %v69_v33 }
  0x4f   :  { %602 = vmatprep.subr.bf16.mxu0 %v694_v18  ;;  %644 = vmatprep.subr.bf16.mxu1 %v825_v0  ;;  %v86_v58 = vadd.f32 %v84_v53, %v80_v52  ;;  %v92_v59 = vmul.f32 %v90_v54, %v68_v30 }
  0x50   :  { %v87_v60 = vadd.f32 %v85_v56, %v81_v55  ;;  %v93_v61 = vmul.f32 %v91_v57, %v69_v33 }
  0x51   :  { %641 = vmatmul.mubr.msk.bf16.vlgmr.msra.gmra.mrb[0].mxu1 %vm281_vm2, %v108_v37  ;;  %v94_v62 = vadd.f32 %v92_v59, %v86_v58 }
  0x52   :  { %603 = vmatpush3.bf16.msra.mxu0 %v695_v22  ;;  %660 = vmatprep.mubr.msk.bf16.mxu1 %vm826_vm0, %v825_v0  ;;  %v95_v63 = vadd.f32 %v93_v61, %v87_v60 }
  0x53   :  { %604 = vmatprep.subr.bf16.mxu0 %v697_v24  ;;  %v98_v1 = vsel %vm96_vm3, %v94_v62, 0.0  ;;  %645 = vmatpush3.bf16.msra.mxu1 %v700_v3 }
  0x54   :  { %373 = vperm.xlu0 %677, %v98_v1   ;;  %v99_v2 = vsel %vm97_vm4, %v95_v63, 0.0  ;;  %646 = vmatprep.subr.bf16.mxu1 %v825_v0 }
  0x56   :  { %605 = vmatpush3.bf16.msra.mxu0 %v698_v32 }
  0x57   :  { %647 = vmatpush3.bf16.msra.mxu1 %v701_v4 }
  0x58   :  { %378 = vperm.xlu0 %677, %v99_v2   ;;  %648 = vmatprep.subr.bf16.mxu1 %v825_v0 }
  0x59   :  { %322 = vmatmul.mubr.bf16.vlgmr.msra.gmra.mrb[0].mxu0 %v106_v41 }
  0x5b   :  { %649 = vmatpush3.bf16.msra.mxu1 %v702_v5 }
  0x5c   :  { %650 = vmatprep.subr.bf16.mxu1 %v825_v0 }
  0x5f   :  { %651 = vmatpush3.bf16.msra.mxu1 %v703_v6 }
  0x60   :  { %652 = vmatprep.subr.bf16.mxu1 %v825_v0 }
  0x63   :  { %653 = vmatpush3.bf16.msra.mxu1 %v704_v7 }
  0x64   :  { %654 = vmatprep.subr.bf16.mxu1 %v825_v0 }
  0x67   :  { %655 = vmatpush3.bf16.msra.mxu1 %v705_v8 }
  0x68   :  { %656 = vmatprep.subr.bf16.mxu1 %v825_v0 }
  0x6b   :  { %657 = vmatpush3.bf16.msra.mxu1 %v706_v9 }
  0x6c   :  { %658 = vmatprep.subr.bf16.mxu1 %v825_v0 }
  0x6f   :  { %659 = vmatpush3.bf16.msra.mxu1 %v707_v10 }
  0xd3   :  { %v374_v16 = vpop.permute.xlu0 %373 }
  0xd7   :  { %v379_v25 = vpop.permute.xlu0 %378 }
 0x124   :  { %v364_v11 = vpop.f32.mrb[0].mxu1 }
 0x125   :  { %v642_v12 = vpop.f32.mrb[1].mxu1 }
 0x126   :  { %v367_v13 = vpop.f32.mrb[2].mxu1 }
 0x127   :  { %v643_v15 = vpop.f32.mrb[3].mxu1 }
 0x12c   :  { %v606_v14 = vpop.f32.mrb[0].mxu0 }
 0x12d   :  { %v607_v17 = vpop.f32.mrb[1].mxu0 }
 0x12e   :  { %v608_v18 = vadd.f32 %v607_v17, %v606_v14  ;;  %v609_v19 = vpop.f32.mrb[2].mxu0 }
 0x12f   :  { %v610_v20 = vpop.f32.mrb[3].mxu0 }
 0x130   :  { %v365_v21 = vadd.f32 %v608_v18, %v364_v11  ;;  %v611_v22 = vadd.f32 %v610_v20, %v609_v19 }
 0x132   :  { %v381_v24 = vmul.f32 %v374_v16, %v365_v21  ;;  %v368_v0 = vadd.f32 %v611_v22, %v367_v13 }
 0x134   :  { %v390_v26 = vadd.f32 %v576_v23, %v381_v24  ;;  %v382_v27 = vmul.f32 %v379_v25, %v368_v0 }
 0x136   :  { %v577_v28 = vmul.f32 -1.442695, %v390_v26  ;;  %v391_v29 = vadd.f32 %v576_v23, %v382_v27 }
 0x138   :  { %708 = vpow2.f32 %v577_v28  ;;  %v578_v30 = vmul.f32 -1.442695, %v391_v29 }
 0x13a   :  { %710 = vpow2.f32 %v578_v30 }
 0x142   :  { %v709_v31 = vpop.eup %708 }
 0x143   :  { %v398_v32 = vadd.f32 1.0, %v709_v31 }
 0x144   :  { %v711_v33 = vpop.eup %710 }
 0x145   :  { %712 = vrcp.f32 %v398_v32  ;;  %v399_v34 = vadd.f32 1.0, %v711_v33 }
 0x147   :  { %714 = vrcp.f32 %v399_v34 }
 0x14f   :  { %v713_v35 = vpop.eup %712 }
 0x150   :  { %v404_v37 = vmul.f32 %v713_v35, %v390_v26 }
 0x151   :  { %v715_v36 = vpop.eup %714 }
 0x152   :  { %v405_v38 = vmul.f32 %v715_v36, %v391_v29 }
 0x154   :  { %v406_v39 = vpack.c.bf16 %v405_v38, %v404_v37 }
 0x156   :  { %661 = vmatmul.mubr.bf16.vlgmr.msra.gmra.mrb[4].mxu1 %v406_v39 }
 0x229   :  { %v512_v41 = vpop.f32.mrb[4].mxu1 }
 0x22a   :  { %v513_v42 = vadd.f32 %v579_v40, %v512_v41  ;;  %v662_v43 = vpop.f32.mrb[5].mxu1 }
 0x22b   :  { %v515_v44 = vpop.f32.mrb[6].mxu1 }
 0x22c   :  { %v588_v45 = vmul.f32 -1.442695, %v513_v42  ;;  %v516_v46 = vadd.f32 %v579_v40, %v515_v44  ;;  %v663_v47 = vpop.f32.mrb[7].mxu1 }
 0x22e   :  { %716 = vpow2.f32 %v588_v45  ;;  %v589_v48 = vmul.f32 -1.442695, %v516_v46 }
 0x230   :  { %718 = vpow2.f32 %v589_v48 }
 0x238   :  { %v717_v49 = vpop.eup %716 }
 0x239   :  { %v525_v50 = vadd.f32 1.0, %v717_v49 }
 0x23a   :  { %v719_v51 = vpop.eup %718 }
 0x23b   :  { %720 = vrcp.f32 %v525_v50  ;;  %v526_v52 = vadd.f32 1.0, %v719_v51 }
 0x23d   :  { %722 = vrcp.f32 %v526_v52 }
 0x245   :  { %v721_v53 = vpop.eup %720 }
 0x246   :  { %v531_v54 = vmul.f32 %v721_v53, %v513_v42 }
 0x247   :  { %v723_v55 = vpop.eup %722 }
 0x248   :  { %533 = vst [vmem:[#allocation8] sm:$0xff] %v531_v54  ;;  %v532_v56 = vmul.f32 %v723_v55, %v516_v46 }
 0x24a   :  { %534 = vst [vmem:[#allocation8 + $0x8] sm:$0xff] %v532_v56 }
 0x24b   :  { %801 = shalt.err (!%p798_p0)
}
 0x24c   :  { %s802_s20 = scalar_lea.hbm %s956_s6, 256 }
 0x24d   :  { %p803_p1 = scmp.ne.s32.totalorder %s956_s6, %s802_s20  ;;  %p806_p2 = scmp.lt.u32.totalorder %s802_s20, %s956_s6 }
 0x24f   :  { %p808_p3 = pnand %p806_p2, %p803_p1 }
 0x251   :  { %811 = shalt.err (!%p808_p3)
}
 0x252   :  { %s829_s24 = smov 128   ;;  %s830_s25 = smov 8  }
 0x253   :  { %546 = dma.vmem_to_hbm [thread:$0]  %s541_s17, 256, %s956_s6, [#allocation4], %s829_s24, %s829_s24, %s830_s25  }
 0x254   :  { %816 = dma.done.wait [#allocation4], 256  }
 0x255   :  { %817 = vsyncadd [#allocation4], 4294967040 }
 0x256   :  { %550 = vsyncpa [#allocation3], 1 }
 0x257   :  { %551 = vsyncpa [#allocation6], 1 }
 0x258   :  { %552 = vsyncpa [#allocation4], 1 }

</bundles_post_ra>
